<compile_context>
chip_gen: v5e
topology: v5e:2x2
jax: 0.10.0
libtpu: 0.0.40
codegen_flags: <defaults>
</compile_context>

<pallas_src>
import functools
import math

import jax
import jax.numpy as jnp
from jax.experimental import pallas as pl
from jax.experimental.pallas import tpu as pltpu

# ------------------------- scaled-down bert-base config ----------------------
HIDDEN = 32          # bert-base: 768
N_HEADS = 2          # bert-base: 12
HEAD_DIM = HIDDEN // N_HEADS
N_LAYERS = 2         # bert-base: 12
INTERMEDIATE = 64    # bert-base: 3072
VOCAB = 64
MAX_POS = 16
TYPE_VOCAB = 2
NUM_CLASSES = 3      # self.dense = nn.Linear(768, 3)
LN_EPS = 1e-12


# --------------------------- in-kernel math helpers ---------------------------
def _ln_math(x, g, b, eps):
    mean = jnp.mean(x, axis=-1, keepdims=True)
    var = jnp.mean(jnp.square(x - mean), axis=-1, keepdims=True)
    return (x - mean) * jax.lax.rsqrt(var + eps) * g + b


def _erf(x):
    # erf via Abramowitz & Stegun 7.1.26 (max abs err ~1.5e-7): matches HF's
    # erf-GELU to f32 precision using only exp/mul/add/where (all VPU/EUP ops).
    a1, a2, a3, a4, a5 = 0.254829592, -0.284496736, 1.421413741, -1.453152027, 1.061405429
    p = 0.3275911
    ax = jnp.abs(x)
    t = 1.0 / (1.0 + p * ax)
    poly = ((((a5 * t + a4) * t + a3) * t + a2) * t + a1) * t
    y = 1.0 - poly * jnp.exp(-ax * ax)
    return jnp.where(x >= 0.0, y, -y)


def _gelu_erf(x):
    return 0.5 * x * (1.0 + _erf(x * 0.7071067811865476))


# ------------------------------ Pallas kernels --------------------------------
def _layernorm_kernel(x_ref, g_ref, b_ref, o_ref, *, eps):
    o_ref[...] = _ln_math(x_ref[...], g_ref[...], b_ref[...], eps).astype(o_ref.dtype)


def layernorm(x, gamma, beta, eps=LN_EPS):
    """LayerNorm over the last axis, x: [M, H].  Single grid point (tiny slab)."""
    M, H = x.shape
    return pl.pallas_call(
        functools.partial(_layernorm_kernel, eps=eps),
        out_shape=jax.ShapeDtypeStruct((M, H), x.dtype),
        grid=(1,),
        in_specs=[
            pl.BlockSpec((M, H), lambda i: (0, 0)),
            pl.BlockSpec((1, H), lambda i: (0, 0)),
            pl.BlockSpec((1, H), lambda i: (0, 0)),
        ],
        out_specs=pl.BlockSpec((M, H), lambda i: (0, 0)),
        compiler_params=pltpu.CompilerParams(dimension_semantics=("arbitrary",)),
    )(x, gamma.reshape(1, H), beta.reshape(1, H))


def _encoder_layer_kernel(x_ref, mask_ref, wqkv_ref, bqkv_ref, wo_ref, bo_ref,
                          ln1g_ref, ln1b_ref, w1_ref, b1_ref, w2_ref, b2_ref,
                          ln2g_ref, ln2b_ref, o_ref, *,
                          batch, seq, n_heads, head_dim, scale, eps):
    hidden = n_heads * head_dim
    x = x_ref[...]                                   # (B*S, H) f32
    mask_bias = mask_ref[...]                        # (B, S) additive HF-style bias

    # ---- fused QKV projection: one MXU push instead of 3 pallas_calls --------
    qkv = jnp.dot(x, wqkv_ref[...], preferred_element_type=jnp.float32) + bqkv_ref[...]
    q = qkv[:, 0 * hidden:1 * hidden]
    k = qkv[:, 1 * hidden:2 * hidden]
    v = qkv[:, 2 * hidden:3 * hidden]

    # ---- multi-head self-attention, fully VMEM/vreg resident -----------------
    # Static (batch, head) unroll; heads are contiguous Dh-wide lane slices so no
    # split_heads/merge_heads relayout is ever materialized in HBM.
    ctx_rows = []
    for b in range(batch):
        bias_b = mask_bias[b:b + 1, :]               # (1, S) broadcast over query rows
        head_cols = []
        for h in range(n_heads):
            r0, c0 = b * seq, h * head_dim
            qs = q[r0:r0 + seq, c0:c0 + head_dim]    # (S, Dh)
            ks = k[r0:r0 + seq, c0:c0 + head_dim]
            vs = v[r0:r0 + seq, c0:c0 + head_dim]
            s = jnp.dot(qs, ks.T, preferred_element_type=jnp.float32) * scale + bias_b
            s = s - jnp.max(s, axis=-1, keepdims=True)
            p = jnp.exp(s)
            p = p / jnp.sum(p, axis=-1, keepdims=True)
            head_cols.append(jnp.dot(p, vs, preferred_element_type=jnp.float32))
        ctx_rows.append(jnp.concatenate(head_cols, axis=-1))   # (S, H)
    ctx = jnp.concatenate(ctx_rows, axis=0)                    # (B*S, H)

    # ---- attention output projection + add & LayerNorm -----------------------
    attn_out = jnp.dot(ctx, wo_ref[...], preferred_element_type=jnp.float32) + bo_ref[...]
    h1 = _ln_math(attn_out + x, ln1g_ref[...], ln1b_ref[...], eps)

    # ---- feed-forward (erf-GELU) + add & LayerNorm ----------------------------
    inter = jnp.dot(h1, w1_ref[...], preferred_element_type=jnp.float32) + b1_ref[...]
    inter = _gelu_erf(inter)
    ffn_out = jnp.dot(inter, w2_ref[...], preferred_element_type=jnp.float32) + b2_ref[...]
    o_ref[...] = _ln_math(ffn_out + h1, ln2g_ref[...], ln2b_ref[...], eps).astype(o_ref.dtype)


def encoder_layer(x, mask_bias, layer, *, batch, seq):
    """One full BERT encoder layer as a single fused pallas_call."""
    M, H = x.shape
    args = [
        x,
        mask_bias,
        layer["qkv"]["w"], layer["qkv"]["b"].reshape(1, -1),
        layer["o"]["w"], layer["o"]["b"].reshape(1, -1),
        layer["ln1"]["g"].reshape(1, -1), layer["ln1"]["b"].reshape(1, -1),
        layer["ffn1"]["w"], layer["ffn1"]["b"].reshape(1, -1),
        layer["ffn2"]["w"], layer["ffn2"]["b"].reshape(1, -1),
        layer["ln2"]["g"].reshape(1, -1), layer["ln2"]["b"].reshape(1, -1),
    ]
    return pl.pallas_call(
        functools.partial(_encoder_layer_kernel, batch=batch, seq=seq,
                          n_heads=N_HEADS, head_dim=HEAD_DIM,
                          scale=1.0 / math.sqrt(HEAD_DIM), eps=LN_EPS),
        out_shape=jax.ShapeDtypeStruct((M, H), x.dtype),
        grid=(1,),
        in_specs=[pl.BlockSpec(a.shape, lambda i: (0, 0)) for a in args],
        out_specs=pl.BlockSpec((M, H), lambda i: (0, 0)),
        compiler_params=pltpu.CompilerParams(dimension_semantics=("arbitrary",)),
    )(*args)


# ------------------------------ parameters ------------------------------------
def init_params(key):
    k_iter = iter(jax.random.split(key, 128))

    def w(shape):
        return jax.random.normal(next(k_iter), shape, jnp.float32) * 0.02

    def dense(din, dout):
        return {"w": w((din, dout)), "b": jnp.zeros((dout,), jnp.float32)}

    def ln():
        return {"g": jnp.ones((HIDDEN,), jnp.float32),
                "b": jnp.zeros((HIDDEN,), jnp.float32)}

    layers = []
    for _ in range(N_LAYERS):
        layers.append({
            "qkv": dense(HIDDEN, 3 * HIDDEN),   # fused Q/K/V projection
            "o": dense(HIDDEN, HIDDEN),
            "ln1": ln(),
            "ffn1": dense(HIDDEN, INTERMEDIATE),
            "ffn2": dense(INTERMEDIATE, HIDDEN),
            "ln2": ln(),
        })
    # TODO(synk): self.lstm = nn.GRU(768, 384, bidirectional=True) is built in
    # __init__ but never called in forward(); no params/compute emitted for it.
    return {
        "word_emb": w((VOCAB, HIDDEN)),
        "pos_emb": w((MAX_POS, HIDDEN)),
        "type_emb": w((TYPE_VOCAB, HIDDEN)),
        "emb_ln": ln(),
        "layers": layers,
        "pooler": dense(HIDDEN, HIDDEN),
        "cls": dense(HIDDEN, NUM_CLASSES),   # self.dense = nn.Linear(768, 3)
    }


# ------------------------------ BERT forward -----------------------------------
def bert_encoder(params, input_ids, token_type_ids, attention_mask):
    B, S = input_ids.shape
    words = params["word_emb"][input_ids]                       # (B, S, H) gather (glue)
    positions = params["pos_emb"][jnp.arange(S)][None, :, :]    # (1, S, H)
    types = params["type_emb"][token_type_ids]                  # (B, S, H)
    emb = (words + positions + types).reshape(B * S, HIDDEN)
    x = layernorm(emb, params["emb_ln"]["g"], params["emb_ln"]["b"])

    # HF-style additive mask kept at (B, S); broadcast to (S, S) happens in-kernel,
    # so the [B*nH, S, S] bias tensor is never materialized in HBM.
    mask_bias = (1.0 - attention_mask.astype(jnp.float32)) * -10000.0

    for layer in params["layers"]:
        x = encoder_layer(x, mask_bias, layer, batch=B, seq=S)

    last_hidden = x.reshape(B, S, HIDDEN)                       # text_output[0]
    cls_tok = last_hidden[:, 0, :]
    # Pooler kept in plain XLA per perf review (M=B, N=H is sub-vreg; a dedicated
    # pallas_call launch would cost more than the matmul).
    pooled = jnp.tanh(cls_tok @ params["pooler"]["w"] + params["pooler"]["b"])
    return last_hidden, pooled                                  # text_output[1] = pooled


def bert_network_forward(params, input_ids, token_type_ids, attention_mask,
                         start_list, end_list):
    last_hidden, pooled = bert_encoder(params, input_ids, token_type_ids,
                                       attention_mask)
    cls_msg = pooled[:, None, :]                                # unsqueeze(1)
    # token_msg[i] = text_output[0][i, start+1 : end+1]   (static Python ints)
    token_msg = [last_hidden[i, s + 1:e + 1]
                 for i, (s, e) in enumerate(zip(start_list, end_list))]
    max_len = max(t.shape[0] for t in token_msg)
    # pad_sequence(batch_first=True, padding_value=0)
    token_msg_ = jnp.stack(
        [jnp.pad(t, ((0, max_len - t.shape[0]), (0, 0))) for t in token_msg],
        axis=0)                                                 # (B, max_len, H)
    input_cat = jnp.concatenate([cls_msg, token_msg_], axis=-2) # (B, 1+max_len, H)
    final_in = input_cat[:, -1, :]                              # input_cat[:, -1, :]
    # Final classifier (N=3) in plain XLA per perf review: a 3-lane-wide pallas
    # output forces masked partial stores and the launch dwarfs the compute.
    return final_in @ params["cls"]["w"] + params["cls"]["b"]   # (B, 3)


# ---------------------------------- main ---------------------------------------
if __name__ == "__main__":
    key = jax.random.PRNGKey(0)
    pkey, ikey = jax.random.split(key)
    params = init_params(pkey)

    B, S = 2, 8
    input_ids = jax.random.randint(ikey, (B, S), 0, VOCAB, dtype=jnp.int32)
    token_type_ids = jnp.zeros((B, S), dtype=jnp.int32)
    attention_mask = jnp.array([[1] * S, [1] * 6 + [0] * 2], dtype=jnp.int32)
    start_list = [1, 2]   # lengths: 3 and 1 -> exercises real token & pad paths
    end_list = [4, 3]

    out = bert_network_forward(params, input_ids, token_type_ids, attention_mask,
                               start_list, end_list)
    out = jax.block_until_ready(out)
    assert out.shape == (B, NUM_CLASSES) and out.dtype == jnp.float32
    print("KERNEL_OK")
</pallas_src>

<mosaic_0001>
module attributes {stable_mosaic.version = 11 : i64} {
  func.func @_layernorm_kernel(%arg0: i32, %arg1: memref<16x32xf32, #tpu.memory_space<vmem>>, %arg2: memref<1x32xf32, #tpu.memory_space<vmem>>, %arg3: memref<1x32xf32, #tpu.memory_space<vmem>>, %arg4: memref<16x32xf32, #tpu.memory_space<vmem>>) attributes {dimension_semantics = [#tpu.dimension_semantics<arbitrary>], iteration_bounds = array<i64: 1>, scalar_prefetch = 0 : i64, scratch_operands = 0 : i64, tpu.core_type = #tpu.core_type<tc>, window_params = [{pipeline_mode = #tpu.pipeline_mode<synchronous>, transform_indices = @transform_0, window_bounds = array<i64: 16, 32>}, {pipeline_mode = #tpu.pipeline_mode<synchronous>, transform_indices = @transform_1, window_bounds = array<i64: 1, 32>}, {pipeline_mode = #tpu.pipeline_mode<synchronous>, transform_indices = @transform_2, window_bounds = array<i64: 1, 32>}, {pipeline_mode = #tpu.pipeline_mode<synchronous>, transform_indices = @transform_3, window_bounds = array<i64: 16, 32>}]} {
    %c0 = arith.constant 0 : index
    %c0_0 = arith.constant 0 : index
    %0 = vector.load %arg1[%c0, %c0_0] : memref<16x32xf32, #tpu.memory_space<vmem>>, vector<16x32xf32>
    %c0_1 = arith.constant 0 : index
    %c0_2 = arith.constant 0 : index
    %1 = vector.load %arg2[%c0_1, %c0_2] : memref<1x32xf32, #tpu.memory_space<vmem>>, vector<1x32xf32>
    %c0_3 = arith.constant 0 : index
    %c0_4 = arith.constant 0 : index
    %2 = vector.load %arg3[%c0_3, %c0_4] : memref<1x32xf32, #tpu.memory_space<vmem>>, vector<1x32xf32>
    %cst = arith.constant dense<0.000000e+00> : vector<16xf32>
    %3 = vector.multi_reduction <add>, %0, %cst [1] : vector<16x32xf32> to vector<16xf32>
    %4 = vector.shape_cast %3 : vector<16xf32> to vector<16x1xf32>
    %cst_5 = arith.constant 3.200000e+01 : f32
    %5 = vector.broadcast %cst_5 : f32 to vector<16x1xf32>
    %6 = arith.divf %4, %5 : vector<16x1xf32>
    %7 = vector.broadcast %6 : vector<16x1xf32> to vector<16x32xf32>
    %8 = arith.subf %0, %7 : vector<16x32xf32>
    %9 = arith.mulf %8, %8 : vector<16x32xf32>
    %cst_6 = arith.constant dense<0.000000e+00> : vector<16xf32>
    %10 = vector.multi_reduction <add>, %9, %cst_6 [1] : vector<16x32xf32> to vector<16xf32>
    %11 = vector.shape_cast %10 : vector<16xf32> to vector<16x1xf32>
    %cst_7 = arith.constant 3.200000e+01 : f32
    %12 = vector.broadcast %cst_7 : f32 to vector<16x1xf32>
    %13 = arith.divf %11, %12 : vector<16x1xf32>
    %14 = vector.broadcast %6 : vector<16x1xf32> to vector<16x32xf32>
    %15 = arith.subf %0, %14 : vector<16x32xf32>
    %cst_8 = arith.constant 9.99999996E-13 : f32
    %16 = vector.broadcast %cst_8 : f32 to vector<16x1xf32>
    %17 = arith.addf %13, %16 : vector<16x1xf32>
    %18 = math.rsqrt %17 : vector<16x1xf32>
    %19 = vector.broadcast %18 : vector<16x1xf32> to vector<16x32xf32>
    %20 = arith.mulf %15, %19 : vector<16x32xf32>
    %21 = vector.broadcast %1 : vector<1x32xf32> to vector<16x32xf32>
    %22 = arith.mulf %20, %21 : vector<16x32xf32>
    %23 = vector.broadcast %2 : vector<1x32xf32> to vector<16x32xf32>
    %24 = arith.addf %22, %23 : vector<16x32xf32>
    %c0_9 = arith.constant 0 : index
    %c0_10 = arith.constant 0 : index
    %25 = vector.load %arg4[%c0_9, %c0_10] : memref<16x32xf32, #tpu.memory_space<vmem>>, vector<16x32xf32>
    tpu.vector_store %arg4[%c0_9, %c0_10], %24 {strides = array<i32>} : memref<16x32xf32, #tpu.memory_space<vmem>>, vector<16x32xf32>,
    return
  }
  func.func @transform_0(%arg0: i32) -> (i32, i32) {
    %c0_i32 = arith.constant 0 : i32
    %c0_i32_0 = arith.constant 0 : i32
    %c0_i32_1 = arith.constant 0 : i32
    return %c0_i32, %c0_i32_0 : i32, i32
  }
  func.func @transform_1(%arg0: i32) -> (i32, i32) {
    %c0_i32 = arith.constant 0 : i32
    %c0_i32_0 = arith.constant 0 : i32
    %c0_i32_1 = arith.constant 0 : i32
    return %c0_i32, %c0_i32_0 : i32, i32
  }
  func.func @transform_2(%arg0: i32) -> (i32, i32) {
    %c0_i32 = arith.constant 0 : i32
    %c0_i32_0 = arith.constant 0 : i32
    %c0_i32_1 = arith.constant 0 : i32
    return %c0_i32, %c0_i32_0 : i32, i32
  }
  func.func @transform_3(%arg0: i32) -> (i32, i32) {
    %c0_i32 = arith.constant 0 : i32
    %c0_i32_0 = arith.constant 0 : i32
    %c0_i32_1 = arith.constant 0 : i32
    return %c0_i32, %c0_i32_0 : i32, i32
  }
}

</mosaic_0001>

<bundles_post_ra>
// kernel: tpu_custom_call.1
= control target key start
LH: loop header
LB: loop body
LE: loop exit
PB: predicated region body
PF: predicated region fallthrough
CT: control target
= control target key end

     0   :  { %8 = vsyncpa [#allocation3], 0  ;;  %s275_s0 = inlined_call_operand.hbm [shape: f32[16,32], index: 0, kind: input, shape index: {}]   ;;  %s276_s1 = inlined_call_operand.hbm [shape: f32[1,32], index: 1, kind: input, shape index: {}]   ;;  %s277_s2 = inlined_call_operand.vmem [shape: f32[1,32], index: 2, kind: input, shape index: {}]   ;;  %s278_s3 = inlined_call_operand.hbm [shape: f32[16,32], index: 3, kind: output, shape index: {}]  }
   0x1   :  { %9 = vsyncpa [#allocation6], 0 }
   0x2   :  { %10 = vsyncpa [#allocation4], 0  ;;  %s15_s14 = sshll.u32 %s275_s0, 4  ;;  %s225_s15 = smov [#allocation2]   ;;  %s16_s14 = int_to_ptr.hbm [resolvable:$true] %s15_s14 }
   0x3   :  { %s17_s16 = sshll.u32 %s225_s15, 4  ;;  %s29_s19 = sshll.u32 %s276_s1, 4  ;;  %s18_s16 = int_to_ptr.vmem [resolvable:$true] %s17_s16  ;;  %s30_s19 = int_to_ptr.hbm [resolvable:$true] %s29_s19 }
   0x4   :  { %s226_s20 = smov 128   ;;  %s227_s21 = smov 8  }
   0x5   :  { %23 = dma.hbm_to_vmem [thread:$0]  %s16_s14, 256, %s18_s16, [#allocation3], %s226_s20, %s226_s20, %s227_s21  }
   0x6   :  { %s228_s22 = smov [#allocation5]  }
   0x7   :  { %s31_s23 = sshll.u32 %s228_s22, 4  ;;  %s32_s23 = int_to_ptr.vmem [resolvable:$true] %s31_s23 }
   0x8   :  { %34 = dma.hbm_to_vmem [thread:$0]  %s30_s19, 16, %s32_s23, [#allocation6]  }
   0x9   :  { %219 = dma.done.wait [#allocation3], 256  }
   0xa   :  { %220 = vsyncadd [#allocation3], 4294967040 }
   0xb   :  { %221 = dma.done.wait [#allocation6], 16  }
   0xc   :  { %222 = vsyncadd [#allocation6], 4294967280  ;;  %vm49_vm0 = vcmask 261120   ;;  %v45_v0 = vld [vmem:[#allocation2] sm:$0xff]  ;;  %v46_v2 = vld [vmem:[#allocation2 + $0x8] sm:$0xff]  ;;  %v229_v4 = vmov 32.0  }
   0xd   :  { %v50_v1 = vsel %vm49_vm0, %v45_v0, 0.0  ;;  %v53_v3 = vsel %vm49_vm0, %v46_v2, 0.0  ;;  %141 = vrcp.f32 %v229_v4  ;;  %v139_v35 = vld [vmem:[#allocation5] ss:$0 sm:$0xff]  ;;  %v140_v39 = vld [vmem:[%s277_s2] ss:$0 sm:$0xff] }
   0xe   :  { %51 = vadd.xlane.f32.xlu0 %v50_v1  ;;  %s230_s24 = smov [#allocation7]   ;;  %s119_s28 = sshll.u32 %s278_s3, 4  ;;  %s120_s28 = int_to_ptr.hbm [resolvable:$true] %s119_s28 }
   0xf   :  { %s117_s25 = sshll.u32 %s230_s24, 4  ;;  %s118_s25 = int_to_ptr.vmem [resolvable:$true] %s117_s25 }
  0x13   :  { %v142_v5 = vpop.eup %141 }
  0x14   :  { %v57_v6 = vmul.f32 32.0, %v142_v5  ;;  %vm61_vm1 = vweird.f32 %v142_v5 }
  0x16   :  { %54 = vadd.xlane.f32.xlu0 %v53_v3  ;;  %v58_v7 = vsub.f32 1.0, %v57_v6 }
  0x18   :  { %v59_v8 = vmul.f32 %v142_v5, %v58_v7 }
  0x1a   :  { %v60_v9 = vadd.f32 %v142_v5, %v59_v8 }
  0x1c   :  { %v62_v10 = vsel %vm61_vm1, %v142_v5, %v60_v9 }
  0x81   :  { %v52_v11 = vpop.xlane.xlu0 %51 }
  0x82   :  { %v63_v12 = vmul.f32 %v62_v10, %v52_v11 }
  0x84   :  { %v65_v13 = vsub.f32 %v45_v0, %v63_v12 }
  0x86   :  { %v67_v14 = vmul.f32 %v65_v13, %v65_v13 }
  0x88   :  { %v69_v15 = vsel %vm49_vm0, %v67_v14, 0.0 }
  0x89   :  { %70 = vadd.xlane.f32.xlu1 %v69_v15  ;;  %v55_v16 = vpop.xlane.xlu0 %54 }
  0x8a   :  { %v64_v17 = vmul.f32 %v62_v10, %v55_v16 }
  0x8c   :  { %v66_v18 = vsub.f32 %v46_v2, %v64_v17 }
  0x8e   :  { %v68_v19 = vmul.f32 %v66_v18, %v66_v18 }
  0x90   :  { %v72_v20 = vsel %vm49_vm0, %v68_v19, 0.0 }
  0x91   :  { %73 = vadd.xlane.f32.xlu1 %v72_v20 }
  0xfc   :  { %v71_v21 = vpop.xlane.xlu1 %70 }
  0xfd   :  { %v75_v22 = vmul.f32 %v71_v21, %v62_v10 }
  0xff   :  { %v77_v23 = vadd.f32 1e-12, %v75_v22 }
 0x101   :  { %143 = vrsqrt.f32 %v77_v23  ;;  %vm85_vm3 = vweird.f32 %v77_v23 }
 0x104   :  { %v74_v24 = vpop.xlane.xlu1 %73 }
 0x105   :  { %v76_v25 = vmul.f32 %v74_v24, %v62_v10 }
 0x107   :  { %v144_v26 = vpop.eup %143  ;;  %v78_v27 = vadd.f32 1e-12, %v76_v25 }
 0x108   :  { %v80_v28 = vmul.f32 %v144_v26, %v77_v23  ;;  %vm86_vm2 = vweird.f32 %v144_v26 }
 0x109   :  { %145 = vrsqrt.f32 %v78_v27  ;;  %vm87_vm4 = vmor %vm85_vm3, %vm86_vm2  ;;  %vm95_vm6 = vweird.f32 %v78_v27 }
 0x10a   :  { %v81_v29 = vmul.f32 %v144_v26, %v80_v28 }
 0x10c   :  { %v82_v30 = vmul.f32 0.5, %v81_v29 }
 0x10e   :  { %v83_v31 = vsub.f32 1.5, %v82_v30 }
 0x10f   :  { %v146_v32 = vpop.eup %145 }
 0x110   :  { %v84_v33 = vmul.f32 %v144_v26, %v83_v31  ;;  %v90_v34 = vmul.f32 %v146_v32, %v78_v27  ;;  %vm96_vm5 = vweird.f32 %v146_v32 }
 0x111   :  { %vm97_vm7 = vmor %vm95_vm6, %vm96_vm5 }
 0x112   :  { %v88_v36 = vsel %vm87_vm4, %v144_v26, %v84_v33  ;;  %v91_v37 = vmul.f32 %v146_v32, %v90_v34 }
 0x113   :  { %v99_v38 = vmul.f32 %v88_v36, %v65_v13 }
 0x114   :  { %v92_v40 = vmul.f32 0.5, %v91_v37 }
 0x115   :  { %v104_v41 = vmul.f32 %v139_v35, %v99_v38 }
 0x116   :  { %v93_v42 = vsub.f32 1.5, %v92_v40 }
 0x117   :  { %v109_v43 = vadd.f32 %v140_v39, %v104_v41 }
 0x118   :  { %v94_v44 = vmul.f32 %v146_v32, %v93_v42 }
 0x119   :  { %111 = vst.msk [vmem:[#allocation7] sm:$0xff] %vm49_vm0, %v109_v43 }
 0x11a   :  { %v98_v45 = vsel %vm97_vm7, %v146_v32, %v94_v44 }
 0x11b   :  { %v100_v46 = vmul.f32 %v98_v45, %v66_v18 }
 0x11d   :  { %v105_v47 = vmul.f32 %v139_v35, %v100_v46 }
 0x11f   :  { %v110_v48 = vadd.f32 %v140_v39, %v105_v47 }
 0x121   :  { %112 = vst.msk [vmem:[#allocation7 + $0x8] sm:$0xff] %vm49_vm0, %v110_v48 }
 0x122   :  { %125 = dma.vmem_to_hbm [thread:$0]  %s118_s25, 256, %s120_s28, [#allocation4], %s226_s20, %s226_s20, %s227_s21  }
 0x123   :  { %223 = dma.done.wait [#allocation4], 256  }
 0x124   :  { %224 = vsyncadd [#allocation4], 4294967040 }
 0x125   :  { %130 = vsyncpa [#allocation3], 1 }
 0x126   :  { %131 = vsyncpa [#allocation6], 1 }
 0x127   :  { %132 = vsyncpa [#allocation4], 1 }

</bundles_post_ra>
